<compile_context>
chip_gen: v7x
topology: tpu7x:2x2x1
jax: 0.10.0
libtpu: 0.0.40
codegen_flags: <defaults>
</compile_context>

<pallas_src>
import functools

import jax
import jax.numpy as jnp
from jax.experimental import pallas as pl
from jax.experimental.pallas import tpu as pltpu


def _round_up(x: int, m: int) -> int:
    return (x + m - 1) // m * m


def _vmem_budget_bytes() -> int:
    """Total working-set target that stays under the default scoped-VMEM limit."""
    kind = ""
    try:
        kind = jax.devices()[0].device_kind.lower()
    except Exception:
        pass
    if "v5 lite" in kind or "v5lite" in kind or "v5e" in kind:
        return 10 << 20   # v5e: 16 MiB default scoped VMEM -> leave headroom
    return 20 << 20       # v6e / v7x: 32 MiB default scoped VMEM


def _mase_kernel(insample_ref, forecast_ref, target_ref, mask_ref, out_ref, *,
                 freq: int, batch: int):
    # Blocks: insample (tb, T_i), forecast/target/mask (tb, T_o).  Time dims
    # are the full (possibly non-128-aligned) array dims; Mosaic handles the
    # internal (8,128) tile masking, so no HBM-side padded copies are needed.
    ins = insample_ref[...].astype(jnp.float32)
    fcst = forecast_ref[...].astype(jnp.float32)
    tgt = target_ref[...].astype(jnp.float32)
    msk = mask_ref[...].astype(jnp.float32)

    tb, t_i = ins.shape
    n = t_i - freq  # static python int, > 0 by construction

    # masep[b] = mean_j |insample[b, j+freq] - insample[b, j]|, j < T_i - freq.
    diff = jnp.abs(ins[:, freq:] - ins[:, :n])                  # (tb, n)
    masep = jnp.sum(diff, axis=1, keepdims=True) * (1.0 / n)    # (tb, 1)

    # divide_no_nan(mask, masep): masep >= 0 and mask >= 0, so NaN/+inf can
    # only arise when masep == 0 (or from garbage rows, handled below) ->
    # gate the (tb, 1) column reciprocal with a single select; the per-element
    # hot path is one multiply.
    inv = jnp.where(masep > 0.0, pl.reciprocal(masep, approx=False), 0.0)
    prod = jnp.abs(tgt - fcst) * (msk * inv)                    # (tb, T_o)

    # Rows past the true batch (partial trailing block) contain unspecified
    # data -- mask the *product*, not just the ratio, so inf*0=NaN from
    # garbage values cannot reach the partial sum.
    row = jax.lax.broadcasted_iota(jnp.int32, (tb, 1), 0)
    valid = (pl.program_id(0) * tb + row) < batch               # (tb, 1)
    partial = jnp.sum(jnp.where(valid, prod, 0.0))

    # Fully lane/sublane-aligned (8,128) output tile: partial at [0,0], zeros
    # elsewhere (the wrapper sums everything, so the zeros contribute nothing).
    r = jax.lax.broadcasted_iota(jnp.int32, (8, 128), 0)
    c = jax.lax.broadcasted_iota(jnp.int32, (8, 128), 1)
    out_ref[...] = jnp.where((r == 0) & (c == 0), partial, 0.0)


def mase_loss(insample, freq, forecast, target, mask, *, block_b=None):
    """Pallas TPU implementation of mase_loss.forward. Returns a scalar f32."""
    insample = jnp.asarray(insample)
    forecast = jnp.asarray(forecast)
    target = jnp.asarray(target)
    mask = jnp.asarray(mask)

    B, T_i = insample.shape
    _, T_o = forecast.shape
    assert target.shape == (B, T_o) and mask.shape == (B, T_o)
    freq = int(freq)
    assert 0 < freq < T_i

    # ---- batch tile size (no HBM-side padding of any input) ---------------
    if block_b is not None:
        tb = int(block_b)
        tb = B if tb >= B else max(8, (tb // 8) * 8)
    elif B <= 8:
        tb = B  # single block; block dim == full array dim is legal
    else:
        in_bytes = (T_i * insample.dtype.itemsize
                    + T_o * (forecast.dtype.itemsize
                             + target.dtype.itemsize
                             + mask.dtype.itemsize))
        work_bytes = 4 * (2 * T_i + 4 * T_o)   # live f32 temporaries (upcasts, diff, prod)
        per_row = 2 * in_bytes + work_bytes    # inputs are double-buffered
        tb = max(8, (_vmem_budget_bytes() // per_row) // 8 * 8)
        tb = min(tb, 4096)
        # Guarantee >= 2 grid blocks so the ("parallel",) axis can shard across
        # both v7x TensorCores; essentially free elsewhere (kernel is DMA-bound).
        tb = min(tb, _round_up(pl.cdiv(B, 2), 8))
        if tb >= B:
            tb = B

    num_blocks = pl.cdiv(B, tb)
    kernel = functools.partial(_mase_kernel, freq=freq, batch=B)

    partials = pl.pallas_call(
        kernel,
        out_shape=jax.ShapeDtypeStruct((num_blocks * 8, 128), jnp.float32),
        grid=(num_blocks,),
        in_specs=[
            pl.BlockSpec((tb, T_i), lambda i: (i, 0)),
            pl.BlockSpec((tb, T_o), lambda i: (i, 0)),
            pl.BlockSpec((tb, T_o), lambda i: (i, 0)),
            pl.BlockSpec((tb, T_o), lambda i: (i, 0)),
        ],
        out_specs=pl.BlockSpec((8, 128), lambda i: (i, 0)),
        compiler_params=pltpu.CompilerParams(
            dimension_semantics=("parallel",)),
    )(insample, forecast, target, mask)

    # Tiny cross-block reduction + normalization by the true element count.
    return jnp.sum(partials) / float(B * T_o)


def _mase_ref(insample, freq, forecast, target, mask):
    """Pure-JAX reference matching the PyTorch semantics."""
    masep = jnp.mean(jnp.abs(insample[:, freq:] - insample[:, :-freq]), axis=1)
    ratio = mask / masep[:, None]
    ratio = jnp.where(jnp.isnan(ratio) | (ratio == jnp.inf), 0.0, ratio)
    return jnp.mean(jnp.abs(target - forecast) * ratio)


if __name__ == "__main__":
    key = jax.random.PRNGKey(0)
    k = jax.random.split(key, 8)

    # Case 1: small module-spec shapes; single block (B <= 8), non-aligned dims.
    B, T_i, T_o, freq = 2, 16, 8, 2
    insample = jax.random.normal(k[0], (B, T_i), dtype=jnp.float32)
    forecast = jax.random.normal(k[1], (B, T_o), dtype=jnp.float32)
    target = jax.random.normal(k[2], (B, T_o), dtype=jnp.float32)
    mask = (jax.random.uniform(k[3], (B, T_o)) > 0.3).astype(jnp.float32)

    loss = jax.block_until_ready(mase_loss(insample, freq, forecast, target, mask))
    ref = _mase_ref(insample, freq, forecast, target, mask)
    assert jnp.allclose(loss, ref, atol=1e-5, rtol=1e-5), (loss, ref)

    # Case 2: non-multiple-of-8 batch, default block sizing (>= 2 blocks with a
    # partial trailing block -> exercises the in-kernel row-validity mask).
    B2, T_i2, T_o2, freq2 = 20, 48, 24, 3
    insample2 = jax.random.normal(k[4], (B2, T_i2), dtype=jnp.float32)
    forecast2 = jax.random.normal(k[5], (B2, T_o2), dtype=jnp.float32)
    target2 = jax.random.normal(k[6], (B2, T_o2), dtype=jnp.float32)
    mask2 = (jax.random.uniform(k[7], (B2, T_o2)) > 0.3).astype(jnp.float32)

    loss2 = jax.block_until_ready(
        mase_loss(insample2, freq2, forecast2, target2, mask2))
    ref2 = _mase_ref(insample2, freq2, forecast2, target2, mask2)
    assert jnp.allclose(loss2, ref2, atol=1e-5, rtol=1e-5), (loss2, ref2)

    # Case 3: forced small block -> 3 grid steps, remainder block of 4 rows.
    loss3 = jax.block_until_ready(
        mase_loss(insample2, freq2, forecast2, target2, mask2, block_b=8))
    assert jnp.allclose(loss3, ref2, atol=1e-5, rtol=1e-5), (loss3, ref2)

    print("KERNEL_OK")
</pallas_src>

<mosaic_0001>
module attributes {stable_mosaic.version = 11 : i64} {
  func.func @_mase_kernel(%arg0: i32, %arg1: memref<2x16xf32, #tpu.memory_space<vmem>>, %arg2: memref<2x8xf32, #tpu.memory_space<vmem>>, %arg3: memref<2x8xf32, #tpu.memory_space<vmem>>, %arg4: memref<2x8xf32, #tpu.memory_space<vmem>>, %arg5: memref<8x128xf32, #tpu.memory_space<vmem>>) attributes {dimension_semantics = [#tpu.dimension_semantics<parallel>], iteration_bounds = array<i64: 1>, scalar_prefetch = 0 : i64, scratch_operands = 0 : i64, tpu.core_type = #tpu.core_type<tc>, window_params = [{transform_indices = @transform_0, window_bounds = array<i64: 2, 16>}, {transform_indices = @transform_1, window_bounds = array<i64: 2, 8>}, {transform_indices = @transform_2, window_bounds = array<i64: 2, 8>}, {transform_indices = @transform_3, window_bounds = array<i64: 2, 8>}, {transform_indices = @transform_4, window_bounds = array<i64: 8, 128>}]} {
    %c0 = arith.constant 0 : index
    %c0_0 = arith.constant 0 : index
    %0 = vector.load %arg1[%c0, %c0_0] : memref<2x16xf32, #tpu.memory_space<vmem>>, vector<2x16xf32>
    %c0_1 = arith.constant 0 : index
    %c0_2 = arith.constant 0 : index
    %1 = vector.load %arg2[%c0_1, %c0_2] : memref<2x8xf32, #tpu.memory_space<vmem>>, vector<2x8xf32>
    %c0_3 = arith.constant 0 : index
    %c0_4 = arith.constant 0 : index
    %2 = vector.load %arg3[%c0_3, %c0_4] : memref<2x8xf32, #tpu.memory_space<vmem>>, vector<2x8xf32>
    %c0_5 = arith.constant 0 : index
    %c0_6 = arith.constant 0 : index
    %3 = vector.load %arg4[%c0_5, %c0_6] : memref<2x8xf32, #tpu.memory_space<vmem>>, vector<2x8xf32>
    %4 = vector.extract_strided_slice %0 {offsets = [0, 2], sizes = [2, 14], strides = [1, 1]} : vector<2x16xf32> to vector<2x14xf32>
    %5 = vector.extract_strided_slice %0 {offsets = [0, 0], sizes = [2, 14], strides = [1, 1]} : vector<2x16xf32> to vector<2x14xf32>
    %6 = arith.subf %4, %5 : vector<2x14xf32>
    %7 = math.absf %6 : vector<2x14xf32>
    %cst = arith.constant dense<0.000000e+00> : vector<2xf32>
    %8 = vector.multi_reduction <add>, %7, %cst [1] : vector<2x14xf32> to vector<2xf32>
    %9 = vector.shape_cast %8 : vector<2xf32> to vector<2x1xf32>
    %cst_7 = arith.constant 0.0714285746 : f32
    %10 = vector.broadcast %cst_7 : f32 to vector<2x1xf32>
    %11 = arith.mulf %9, %10 : vector<2x1xf32>
    %cst_8 = arith.constant 0.000000e+00 : f32
    %12 = vector.broadcast %cst_8 : f32 to vector<2x1xf32>
    %13 = arith.cmpf ogt, %11, %12 : vector<2x1xf32>
    %14 = tpu.reciprocal %11 : vector<2x1xf32> -> vector<2x1xf32>
    %cst_9 = arith.constant 0.000000e+00 : f32
    %15 = vector.broadcast %cst_9 : f32 to vector<2x1xf32>
    %16 = arith.select %13, %14, %15 : vector<2x1xi1>, vector<2x1xf32>
    %17 = arith.subf %2, %1 : vector<2x8xf32>
    %18 = math.absf %17 : vector<2x8xf32>
    %19 = vector.broadcast %16 : vector<2x1xf32> to vector<2x8xf32>
    %20 = arith.mulf %3, %19 : vector<2x8xf32>
    %21 = arith.mulf %18, %20 : vector<2x8xf32>
    %22 = tpu.iota {dimensions = array<i32: 0>} : vector<2x1xi32>
    %c2_i32 = arith.constant 2 : i32
    %23 = arith.muli %arg0, %c2_i32 : i32
    %24 = vector.broadcast %23 : i32 to vector<2x1xi32>
    %25 = arith.addi %24, %22 : vector<2x1xi32>
    %c2_i32_10 = arith.constant 2 : i32
    %26 = vector.broadcast %c2_i32_10 : i32 to vector<2x1xi32>
    %27 = arith.cmpi slt, %25, %26 : vector<2x1xi32>
    %cst_11 = arith.constant 0.000000e+00 : f32
    %28 = vector.shape_cast %27 : vector<2x1xi1> to vector<2x1xi1>
    %29 = vector.broadcast %28 : vector<2x1xi1> to vector<2x8xi1>
    %30 = vector.broadcast %cst_11 : f32 to vector<2x8xf32>
    %31 = arith.select %29, %21, %30 : vector<2x8xi1>, vector<2x8xf32>
    %32 = vector.shape_cast %31 : vector<2x8xf32> to vector<1x2x8xf32>
    %cst_12 = arith.constant dense<0.000000e+00> : vector<1xf32>
    %33 = vector.multi_reduction <add>, %32, %cst_12 [1, 2] : vector<1x2x8xf32> to vector<1xf32>
    %34 = vector.shape_cast %33 : vector<1xf32> to vector<1x1x1xf32>
    %35 = vector.extract %34[0, 0, 0] : f32 from vector<1x1x1xf32>
    %36 = tpu.iota {dimensions = array<i32: 0>} : vector<8x128xi32>
    %37 = tpu.iota {dimensions = array<i32: 1>} : vector<8x128xi32>
    %c0_i32 = arith.constant 0 : i32
    %38 = vector.broadcast %c0_i32 : i32 to vector<8x128xi32>
    %39 = arith.cmpi eq, %36, %38 : vector<8x128xi32>
    %c0_i32_13 = arith.constant 0 : i32
    %40 = vector.broadcast %c0_i32_13 : i32 to vector<8x128xi32>
    %41 = arith.cmpi eq, %37, %40 : vector<8x128xi32>
    %42 = arith.andi %39, %41 : vector<8x128xi1>
    %cst_14 = arith.constant 0.000000e+00 : f32
    %43 = vector.broadcast %35 : f32 to vector<8x128xf32>
    %44 = vector.broadcast %cst_14 : f32 to vector<8x128xf32>
    %45 = arith.select %42, %43, %44 : vector<8x128xi1>, vector<8x128xf32>
    %c0_15 = arith.constant 0 : index
    %c0_16 = arith.constant 0 : index
    %46 = vector.load %arg5[%c0_15, %c0_16] : memref<8x128xf32, #tpu.memory_space<vmem>>, vector<8x128xf32>
    tpu.vector_store %arg5[%c0_15, %c0_16], %45 {strides = array<i32>} : memref<8x128xf32, #tpu.memory_space<vmem>>, vector<8x128xf32>,
    return
  }
  func.func @transform_0(%arg0: i32) -> (i32, i32) {
    %c0_i32 = arith.constant 0 : i32
    %c0_i32_0 = arith.constant 0 : i32
    return %arg0, %c0_i32 : i32, i32
  }
  func.func @transform_1(%arg0: i32) -> (i32, i32) {
    %c0_i32 = arith.constant 0 : i32
    %c0_i32_0 = arith.constant 0 : i32
    return %arg0, %c0_i32 : i32, i32
  }
  func.func @transform_2(%arg0: i32) -> (i32, i32) {
    %c0_i32 = arith.constant 0 : i32
    %c0_i32_0 = arith.constant 0 : i32
    return %arg0, %c0_i32 : i32, i32
  }
  func.func @transform_3(%arg0: i32) -> (i32, i32) {
    %c0_i32 = arith.constant 0 : i32
    %c0_i32_0 = arith.constant 0 : i32
    return %arg0, %c0_i32 : i32, i32
  }
  func.func @transform_4(%arg0: i32) -> (i32, i32) {
    %c0_i32 = arith.constant 0 : i32
    %c0_i32_0 = arith.constant 0 : i32
    return %arg0, %c0_i32 : i32, i32
  }
}

</mosaic_0001>

<bundles_post_ra>
// kernel: tpu_custom_call.1
= control target key start
LH: loop header
LB: loop body
LE: loop exit
PB: predicated region body
PF: predicated region fallthrough
CT: control target
= control target key end

     0   :  { %9 = vsyncpa [#allocation3], 0  ;;  %s217_s0 = inlined_call_operand.hbm [shape: f32[2,16], index: 0, kind: input, shape index: {}]   ;;  %s218_s1 = inlined_call_operand.vmem [shape: f32[2,8], index: 1, kind: input, shape index: {}]   ;;  %s219_s2 = inlined_call_operand.vmem [shape: f32[2,8], index: 2, kind: input, shape index: {}]   ;;  %s220_s3 = inlined_call_operand.vmem [shape: f32[2,8], index: 3, kind: input, shape index: {}]   ;;  %s221_s4 = inlined_call_operand.hbm [shape: f32[8,128], index: 4, kind: output, shape index: {}]  }
   0x1   :  { %10 = vsyncpa [#allocation4], 0  ;;  %s155_s15 = smov [#allocation2]   ;;  %s107_s19 = scalar_lea.hbm %s217_s0, 32 }
   0x2   :  { %s17_s16 = sshll.u32 %s155_s15, 4  ;;  %p108_p0 = scmp.ne.s32.totalorder %s217_s0, %s107_s19  ;;  %s18_s16 = int_to_ptr.vmem [resolvable:$true] %s17_s16 }
   0x3   :  { %p111_p1 = scmp.lt.u32.totalorder %s107_s19, %s217_s0 }
   0x5   :  { %p113_p2 = pnand %p111_p1, %p108_p0 }
   0x7   :  { %116 = shalt.err (!%p113_p2)
}
   0x8   :  { %s117_s24 = scalar_lea.vmem %s18_s16, 32  ;;  %p122_p4 = scmp.lt.s32.totalorder %s18_s16, %s18_s16 }
   0x9   :  { %p118_p3 = scmp.ne.s32.totalorder %s18_s16, %s117_s24  ;;  %p123_p5 = scmp.lt.s32.totalorder %s117_s24, %s117_s24 }
   0xb   :  { %p124_p6 = por %p123_p5, %p122_p4 }
   0xd   :  { %p125_p7 = pnand %p124_p6, %p118_p3 }
   0xf   :  { %128 = shalt.err (!%p125_p7)
}
  0x10   :  { %20 = dma.hbm_to_vmem [thread:$0]  %s217_s0, 32, %s18_s16, [#allocation3]  }
  0x11   :  { %151 = dma.done.wait [#allocation3], 32  }
  0x12   :  { %152 = vsyncadd [#allocation3], 4294967264  ;;  %v30_v0 = vld [vmem:[#allocation2] sm:$0x3]  ;;  %s156_s27 = smov 2   ;;  %s157_s28 = smov 126   ;;  %v56_v10 = vlaneseq }
  0x13   :  { %35 = vrot.lane.b32.xlu0 %v30_v0, %s156_s27  ;;  %vm44_vm0 = vcmask 107520   ;;  %v31_v8 = vld [vmem:[%s218_s1] sm:$0x3]  ;;  %vm65_vm3 = vcmask 58368   ;;  %s158_s1 = smov [#allocation5]  }
  0x14   :  { %v32_v9 = vld [vmem:[%s219_s2] sm:$0x3]  ;;  %v57_v13 = vshrl.u32 %v56_v10, 7  ;;  %v77_v28 = vand.u32 127, %v56_v10  ;;  %s90_s2 = sshll.u32 %s158_s1, 4  ;;  %s91_s2 = int_to_ptr.vmem [resolvable:$true] %s90_s2 }
  0x15   :  { %v52_v11 = vsub.f32 %v32_v9, %v31_v8  ;;  %v33_v12 = vld [vmem:[%s220_s3] sm:$0x3]  ;;  %s129_s8 = scalar_lea.vmem %s91_s2, 128  ;;  %p134_p9 = scmp.lt.s32.totalorder %s91_s2, %s91_s2 }
  0x16   :  { %vm61_vm2 = vcmp.lt.s32.totalorder %v57_v13, 2  ;;  %vm78_vm4 = vcmp.eq.s32.totalorder %v57_v13, 0  ;;  %vm79_vm5 = vcmp.eq.s32.totalorder %v77_v28, 0  ;;  %p130_p8 = scmp.ne.s32.totalorder %s91_s2, %s129_s8  ;;  %p135_p10 = scmp.lt.s32.totalorder %s129_s8, %s129_s8 }
  0x17   :  { %v53_v15 = vand.u32 2147483647, %v52_v11  ;;  %vm80_vm6 = vmand %vm78_vm4, %vm79_vm5 }
  0x18   :  { %p136_p11 = por %p135_p10, %p134_p9 }
  0x1a   :  { %p137_p12 = pnand %p136_p11, %p130_p8 }
  0x85   :  { %v36_v1 = vpop.permute.xlu0 %35 }
  0x86   :  { %v38_v2 = vsub.f32 %v30_v0, %v36_v1 }
  0x88   :  { %v39_v3 = vand.u32 2147483647, %v38_v2 }
  0x8a   :  { %41 = vrot.lane.b32.xlu0 %v39_v3, %s157_s28 }
  0xfc   :  { %v42_v4 = vpop.permute.xlu0 %41 }
  0xfd   :  { %v45_v5 = vsel %vm44_vm0, %v42_v4, 0.0 }
  0xfe   :  { %46 = vadd.xlane.f32.xlu1 %v45_v5 }
 0x18b   :  { %v47_v6 = vpop.xlane.xlu1 %46 }
 0x18c   :  { %v48_v7 = vmul.f32 0.071428575, %v47_v6 }
 0x18e   :  { %105 = vrcp.f32 %v48_v7  ;;  %vm49_vm1 = vcmp.gt.f32.partialorder %v48_v7, 0.0 }
 0x198   :  { %v106_v14 = vpop.eup %105 }
 0x199   :  { %v51_v16 = vsel %vm49_vm1, %v106_v14, 0.0 }
 0x19a   :  { %v54_v17 = vmul.f32 %v51_v16, %v33_v12 }
 0x19c   :  { %v55_v18 = vmul.f32 %v54_v17, %v53_v15 }
 0x19e   :  { %v64_v19 = vsel %vm61_vm2, %v55_v18, 0.0 }
 0x19f   :  { %v66_v20 = vsel %vm65_vm3, %v64_v19, 0.0 }
 0x1a0   :  { %67 = vadd.xlane.f32.xlu1 %v66_v20 }
 0x22d   :  { %v68_v21 = vpop.xlane.xlu1 %67 }
 0x22e   :  { %v69_v22 = vrot.slane %v68_v21, 4 }
 0x230   :  { %v70_v23 = vadd.f32 %v69_v22, %v68_v21 }
 0x232   :  { %v71_v24 = vrot.slane %v70_v23, 2 }
 0x234   :  { %v72_v25 = vadd.f32 %v71_v24, %v70_v23 }
 0x236   :  { %v73_v26 = vrot.slane %v72_v25, 1 }
 0x238   :  { %v74_v27 = vadd.f32 %v73_v26, %v72_v25 }
 0x23a   :  { %99 = vpush %v74_v27 }
 0x26b   :  { %s100_s3 = spop %99 }
 0x26c   :  { %v81_v29 = vstv %s100_s3 }
 0x26d   :  { %v82_v30 = vsel %vm80_vm6, %v81_v29, 0.0 }
 0x26e   :  { %83 = vst [vmem:[#allocation5] sm:$0xff] %v82_v30 }
 0x26f   :  { %140 = shalt.err (!%p137_p12)
}
 0x270   :  { %s141_s11 = scalar_lea.hbm %s221_s4, 128 }
 0x271   :  { %p142_p13 = scmp.ne.s32.totalorder %s221_s4, %s141_s11  ;;  %p145_p0 = scmp.lt.u32.totalorder %s141_s11, %s221_s4 }
 0x273   :  { %p147_p1 = pnand %p145_p0, %p142_p13 }
 0x275   :  { %150 = shalt.err (!%p147_p1)
}
 0x276   :  { %93 = dma.vmem_to_hbm [thread:$0]  %s91_s2, 128, %s221_s4, [#allocation4]  }
 0x277   :  { %153 = dma.done.wait [#allocation4], 128  }
 0x278   :  { %154 = vsyncadd [#allocation4], 4294967168 }
 0x279   :  { %97 = vsyncpa [#allocation3], 1 }
 0x27a   :  { %98 = vsyncpa [#allocation4], 1 }

</bundles_post_ra>
